<compile_context>
chip_gen: v7x
topology: tpu7x:2x2x1
jax: 0.10.0
libtpu: 0.0.40
codegen_flags: <defaults>
</compile_context>

<pallas_src>
import functools

import jax
import jax.numpy as jnp
from jax.experimental import pallas as pl
from jax.experimental.pallas import tpu as pltpu

LANE = 128


# --------------------------------------------------------------------------
# Kernel
# --------------------------------------------------------------------------
def duelqnn_kernel(x_ref, w_ref, b_ref, out_ref, *, offs):
    o0, o1, o2, o3, o4 = offs
    # Layer 0 (shared; min-max normalization pre-folded): Linear + ReLU
    h = jnp.dot(x_ref[...], w_ref[o0:o1, :],
                preferred_element_type=jnp.float32) + b_ref[0:1, :]
    h = jnp.maximum(h, 0.0)
    # Layer 1 (shared): Linear + ReLU
    h = jnp.dot(h, w_ref[o1:o2, :],
                preferred_element_type=jnp.float32) + b_ref[1:2, :]
    h = jnp.maximum(h, 0.0)
    # Fused value|advantage hidden layer: Linear + ReLU
    h = jnp.dot(h, w_ref[o2:o3, :],
                preferred_element_type=jnp.float32) + b_ref[2:3, :]
    h = jnp.maximum(h, 0.0)
    # Fused heads: V broadcast + dueling-centered advantage -> logits
    out_ref[...] = jnp.dot(h, w_ref[o3:o4, :],
                           preferred_element_type=jnp.float32) + b_ref[3:4, :]
    # TODO(synk): distributional (C51) branch would reshape to (B, A, atomn) and
    # softmax over atoms; not enabled in this configuration (distributional=False).


# --------------------------------------------------------------------------
# Host-side parameter construction / packing
# --------------------------------------------------------------------------
def _torch_linear_init(key, in_features, out_features):
    """Deterministic init mimicking torch.nn.Linear: U(-1/sqrt(fan_in), 1/sqrt(fan_in)).
    Stored already transposed: (in_features, out_features) so y = x @ W + b."""
    kw, kb = jax.random.split(key)
    bound = 1.0 / jnp.sqrt(jnp.float32(in_features))
    w = jax.random.uniform(kw, (in_features, out_features), jnp.float32, -bound, bound)
    b = jax.random.uniform(kb, (1, out_features), jnp.float32, -bound, bound)
    return w, b


def make_raw_params(key, state_size, action_size, hidden_shared, hidden_split):
    keys = jax.random.split(key, 6)
    w_s0, b_s0 = _torch_linear_init(keys[0], state_size, hidden_shared)
    w_s1, b_s1 = _torch_linear_init(keys[1], hidden_shared, hidden_shared)
    w_v0, b_v0 = _torch_linear_init(keys[2], hidden_shared, hidden_split)
    w_v1, b_v1 = _torch_linear_init(keys[3], hidden_split, 1)
    w_a0, b_a0 = _torch_linear_init(keys[4], hidden_shared, hidden_split)
    w_a1, b_a1 = _torch_linear_init(keys[5], hidden_split, action_size)
    return (w_s0, b_s0, w_s1, b_s1,
            w_v0, b_v0, w_v1, b_v1,
            w_a0, b_a0, w_a1, b_a1)


def _pad_to(w, rows, cols=LANE):
    r, c = w.shape
    return jnp.pad(w, ((0, rows - r), (0, cols - c)))


def pack_params(raw_params, *, state_size, action_size, state_min, state_max):
    """Fold normalization + dueling combine into the weights, fuse the split
    hidden layers and the two heads, zero-pad to lane width 128, and pack
    everything into one weight slab + one bias slab (2 DMAs)."""
    (w_s0, b_s0, w_s1, b_s1,
     w_v0, b_v0, w_v1, b_v1,
     w_a0, b_a0, w_a1, b_a1) = raw_params

    assert state_max != state_min, "state_max == state_min would divide by zero"
    scale = 1.0 / (state_max - state_min)

    # Layer 0: fold (x - min) * scale into W/b.
    w0 = w_s0 * scale
    b0 = b_s0 - (state_min * scale) * jnp.sum(w_s0, axis=0, keepdims=True)
    # Layer 1: unchanged.
    w1, b1 = w_s1, b_s1
    # Fused value|advantage hidden layer (lane-concat).
    w2 = jnp.concatenate([w_v0, w_a0], axis=1)          # (H, 2*Hs)
    b2 = jnp.concatenate([b_v0, b_a0], axis=1)          # (1, 2*Hs)
    # Fused heads: dueling centering folded into advantage head, V broadcast
    # folded by tiling w_v1 across the A output columns.
    A = action_size
    center = jnp.eye(A, dtype=jnp.float32) - jnp.full((A, A), 1.0 / A, jnp.float32)
    w_a1_c = w_a1 @ center                               # (Hs, A)
    b_a1_c = b_a1 @ center                               # (1, A)
    w3 = jnp.concatenate([jnp.tile(w_v1, (1, A)), w_a1_c], axis=0)  # (2*Hs, A)
    b3 = b_v1 + b_a1_c                                   # (1, A)

    # Pad every block to lane width 128; pad K of layers 1-3 to 128 so all
    # intermediate activations stay a single lane-dense (B, 128) vreg group.
    w0p = _pad_to(w0, state_size)        # (S, 128)
    w1p = _pad_to(w1, LANE)              # (128, 128)
    w2p = _pad_to(w2, LANE)              # (128, 128)
    w3p = _pad_to(w3, LANE)              # (128, 128)
    w_slab = jnp.concatenate([w0p, w1p, w2p, w3p], axis=0)   # (S + 384, 128)

    b_slab = jnp.concatenate(
        [_pad_to(b0, 1), _pad_to(b1, 1), _pad_to(b2, 1), _pad_to(b3, 1),
         jnp.zeros((4, LANE), jnp.float32)], axis=0)          # (8, 128)

    offs = (0, state_size, state_size + LANE,
            state_size + 2 * LANE, state_size + 3 * LANE)
    return w_slab, b_slab, offs


# --------------------------------------------------------------------------
# Wrapper
# --------------------------------------------------------------------------
def duelqnn_forward(x, w_slab, b_slab, *, action_size, offs):
    batch = x.shape[0]
    kernel = functools.partial(duelqnn_kernel, offs=offs)
    vmem = pl.BlockSpec(memory_space=pltpu.MemorySpace.VMEM)
    logits_padded = pl.pallas_call(
        kernel,
        out_shape=jax.ShapeDtypeStruct((batch, LANE), jnp.float32),
        in_specs=[vmem, vmem, vmem],
        out_specs=vmem,
    )(x, w_slab, b_slab)
    return logits_padded[:, :action_size]


# --------------------------------------------------------------------------
# Pure-JAX reference of the ORIGINAL (unfolded) forward pass
# --------------------------------------------------------------------------
def duelqnn_reference(x, raw_params, *, state_min, state_max):
    (w_s0, b_s0, w_s1, b_s1,
     w_v0, b_v0, w_v1, b_v1,
     w_a0, b_a0, w_a1, b_a1) = raw_params
    x = (x - state_min) / (state_max - state_min)
    h = jnp.maximum(x @ w_s0 + b_s0, 0.0)
    h = jnp.maximum(h @ w_s1 + b_s1, 0.0)
    v = jnp.maximum(h @ w_v0 + b_v0, 0.0)
    v = v @ w_v1 + b_v1
    a = jnp.maximum(h @ w_a0 + b_a0, 0.0)
    a = a @ w_a1 + b_a1
    return v + (a - jnp.mean(a, axis=1, keepdims=True))


if __name__ == "__main__":
    # Small, module-consistent shapes.
    batch = 8
    state_size = 16
    action_size = 4
    hidden_size_shared = 32
    hidden_size_split = 32
    state_min, state_max = -1.0, 1.0

    key = jax.random.PRNGKey(0)
    k_params, k_x = jax.random.split(key)
    raw_params = make_raw_params(k_params, state_size, action_size,
                                 hidden_size_shared, hidden_size_split)
    w_slab, b_slab, offs = pack_params(raw_params,
                                       state_size=state_size,
                                       action_size=action_size,
                                       state_min=state_min,
                                       state_max=state_max)
    x = jax.random.uniform(k_x, (batch, state_size), jnp.float32,
                           minval=state_min, maxval=state_max)

    out = duelqnn_forward(x, w_slab, b_slab,
                          action_size=action_size, offs=offs)
    out = jax.block_until_ready(out)

    ref = duelqnn_reference(x, raw_params,
                            state_min=state_min, state_max=state_max)
    assert out.shape == (batch, action_size)
    assert jnp.allclose(out, ref, atol=1e-4, rtol=1e-4), "kernel/reference mismatch"

    print("KERNEL_OK")
</pallas_src>

<mosaic_0001>
module attributes {stable_mosaic.version = 11 : i64} {
  func.func @duelqnn_kernel(%arg0: memref<8x16xf32, #tpu.memory_space<vmem>>, %arg1: memref<400x128xf32, #tpu.memory_space<vmem>>, %arg2: memref<8x128xf32, #tpu.memory_space<vmem>>, %arg3: memref<8x128xf32, #tpu.memory_space<vmem>>) attributes {dimension_semantics = [], scalar_prefetch = 0 : i64, scratch_operands = 0 : i64, tpu.core_type = #tpu.core_type<tc>} {
    %c0 = arith.constant 0 : index
    %c0_0 = arith.constant 0 : index
    %0 = vector.load %arg0[%c0, %c0_0] : memref<8x16xf32, #tpu.memory_space<vmem>>, vector<8x16xf32>
    %c0_1 = arith.constant 0 : index
    %c0_2 = arith.constant 0 : index
    %1 = vector.load %arg1[%c0_1, %c0_2] : memref<400x128xf32, #tpu.memory_space<vmem>>, vector<16x128xf32>
    %cst = arith.constant dense<0.000000e+00> : vector<8x128xf32>
    %2 = tpu.matmul %0, %1, %cst {dimension_numbers = #tpu.dot_dimension_numbers<[1], [0], [0], [1], [0, 0, 1, 1], [], []>} : vector<8x16xf32>, vector<16x128xf32>, vector<8x128xf32> -> vector<8x128xf32>
    %c0_3 = arith.constant 0 : index
    %c0_4 = arith.constant 0 : index
    %3 = vector.load %arg2[%c0_3, %c0_4] : memref<8x128xf32, #tpu.memory_space<vmem>>, vector<1x128xf32>
    %4 = vector.broadcast %3 : vector<1x128xf32> to vector<8x128xf32>
    %5 = arith.addf %2, %4 : vector<8x128xf32>
    %cst_5 = arith.constant 0.000000e+00 : f32
    %6 = vector.broadcast %cst_5 : f32 to vector<8x128xf32>
    %7 = arith.maximumf %5, %6 : vector<8x128xf32>
    %c16 = arith.constant 16 : index
    %c0_6 = arith.constant 0 : index
    %8 = vector.load %arg1[%c16, %c0_6] : memref<400x128xf32, #tpu.memory_space<vmem>>, vector<128x128xf32>
    %cst_7 = arith.constant dense<0.000000e+00> : vector<8x128xf32>
    %9 = tpu.matmul %7, %8, %cst_7 {dimension_numbers = #tpu.dot_dimension_numbers<[1], [0], [0], [1], [0, 0, 1, 1], [], []>} : vector<8x128xf32>, vector<128x128xf32>, vector<8x128xf32> -> vector<8x128xf32>
    %c1 = arith.constant 1 : index
    %c0_8 = arith.constant 0 : index
    %10 = vector.load %arg2[%c1, %c0_8] : memref<8x128xf32, #tpu.memory_space<vmem>>, vector<1x128xf32>
    %11 = vector.broadcast %10 : vector<1x128xf32> to vector<8x128xf32>
    %12 = arith.addf %9, %11 : vector<8x128xf32>
    %cst_9 = arith.constant 0.000000e+00 : f32
    %13 = vector.broadcast %cst_9 : f32 to vector<8x128xf32>
    %14 = arith.maximumf %12, %13 : vector<8x128xf32>
    %c144 = arith.constant 144 : index
    %c0_10 = arith.constant 0 : index
    %15 = vector.load %arg1[%c144, %c0_10] : memref<400x128xf32, #tpu.memory_space<vmem>>, vector<128x128xf32>
    %cst_11 = arith.constant dense<0.000000e+00> : vector<8x128xf32>
    %16 = tpu.matmul %14, %15, %cst_11 {dimension_numbers = #tpu.dot_dimension_numbers<[1], [0], [0], [1], [0, 0, 1, 1], [], []>} : vector<8x128xf32>, vector<128x128xf32>, vector<8x128xf32> -> vector<8x128xf32>
    %c2 = arith.constant 2 : index
    %c0_12 = arith.constant 0 : index
    %17 = vector.load %arg2[%c2, %c0_12] : memref<8x128xf32, #tpu.memory_space<vmem>>, vector<1x128xf32>
    %18 = vector.broadcast %17 : vector<1x128xf32> to vector<8x128xf32>
    %19 = arith.addf %16, %18 : vector<8x128xf32>
    %cst_13 = arith.constant 0.000000e+00 : f32
    %20 = vector.broadcast %cst_13 : f32 to vector<8x128xf32>
    %21 = arith.maximumf %19, %20 : vector<8x128xf32>
    %c272 = arith.constant 272 : index
    %c0_14 = arith.constant 0 : index
    %22 = vector.load %arg1[%c272, %c0_14] : memref<400x128xf32, #tpu.memory_space<vmem>>, vector<128x128xf32>
    %cst_15 = arith.constant dense<0.000000e+00> : vector<8x128xf32>
    %23 = tpu.matmul %21, %22, %cst_15 {dimension_numbers = #tpu.dot_dimension_numbers<[1], [0], [0], [1], [0, 0, 1, 1], [], []>} : vector<8x128xf32>, vector<128x128xf32>, vector<8x128xf32> -> vector<8x128xf32>
    %c3 = arith.constant 3 : index
    %c0_16 = arith.constant 0 : index
    %24 = vector.load %arg2[%c3, %c0_16] : memref<8x128xf32, #tpu.memory_space<vmem>>, vector<1x128xf32>
    %25 = vector.broadcast %24 : vector<1x128xf32> to vector<8x128xf32>
    %26 = arith.addf %23, %25 : vector<8x128xf32>
    %c0_17 = arith.constant 0 : index
    %c0_18 = arith.constant 0 : index
    %27 = vector.load %arg3[%c0_17, %c0_18] : memref<8x128xf32, #tpu.memory_space<vmem>>, vector<8x128xf32>
    tpu.vector_store %arg3[%c0_17, %c0_18], %26 {strides = array<i32>} : memref<8x128xf32, #tpu.memory_space<vmem>>, vector<8x128xf32>,
    return
  }
}

</mosaic_0001>

<bundles_post_ra>
// kernel: tpu_custom_call.1
= control target key start
LH: loop header
LB: loop body
LE: loop exit
PB: predicated region body
PF: predicated region fallthrough
CT: control target
= control target key end

     0   :  { %8 = vsyncpa [#allocation3], 0  ;;  %s886_s0 = inlined_call_operand.hbm [shape: f32[8,16], index: 0, kind: input, shape index: {}]   ;;  %s887_s1 = inlined_call_operand.hbm [shape: f32[400,128], index: 1, kind: input, shape index: {}]   ;;  %s888_s2 = inlined_call_operand.hbm [shape: f32[8,128], index: 2, kind: input, shape index: {}]   ;;  %s889_s3 = inlined_call_operand.hbm [shape: f32[8,128], index: 3, kind: output, shape index: {}]  }
   0x1   :  { %9 = vsyncpa [#allocation6], 0 }
   0x2   :  { %10 = vsyncpa [#allocation4], 0  ;;  %s776_s12 = smov [#allocation5]   ;;  %s682_s16 = scalar_lea.hbm %s887_s1, 6400 }
   0x3   :  { %s26_s13 = sshll.u32 %s776_s12, 4  ;;  %p683_p0 = scmp.ne.s32.totalorder %s887_s1, %s682_s16  ;;  %s27_s13 = int_to_ptr.vmem [resolvable:$true] %s26_s13 }
   0x4   :  { %p686_p1 = scmp.lt.u32.totalorder %s682_s16, %s887_s1 }
   0x6   :  { %p688_p2 = pnand %p686_p1, %p683_p0 }
   0x8   :  { %691 = shalt.err (!%p688_p2)
}
   0x9   :  { %s692_s21 = scalar_lea.vmem %s27_s13, 6400  ;;  %p697_p4 = scmp.lt.s32.totalorder %s27_s13, %s27_s13 }
   0xa   :  { %p693_p3 = scmp.ne.s32.totalorder %s27_s13, %s692_s21  ;;  %p698_p5 = scmp.lt.s32.totalorder %s692_s21, %s692_s21 }
   0xc   :  { %p699_p6 = por %p698_p5, %p697_p4 }
   0xe   :  { %p700_p7 = pnand %p699_p6, %p693_p3 }
  0x10   :  { %703 = shalt.err (!%p700_p7)
}
  0x11   :  { %s777_s22 = smov 128   ;;  %s778_s23 = smov 8  }
  0x12   :  { %32 = dma.hbm_to_vmem [thread:$0]  %s887_s1, 6400, %s27_s13, [#allocation6], %s777_s22, %s777_s22, %s778_s23  }
  0x13   :  { %s779_s26 = smov [#allocation2]   ;;  %s780_s28 = smov [#allocation7]  }
  0x14   :  { %s17_s27 = sshll.u32 %s779_s26, 4  ;;  %s39_s29 = sshll.u32 %s780_s28, 4  ;;  %s18_s27 = int_to_ptr.vmem [resolvable:$true] %s17_s27  ;;  %s40_s29 = int_to_ptr.vmem [resolvable:$true] %s39_s29 }
  0x15   :  { %s704_s5 = scalar_lea.hbm %s886_s0, 128 }
  0x16   :  { %p705_p8 = scmp.ne.s32.totalorder %s886_s0, %s704_s5  ;;  %p708_p9 = scmp.lt.u32.totalorder %s704_s5, %s886_s0 }
  0x18   :  { %p710_p10 = pnand %p708_p9, %p705_p8 }
  0x1a   :  { %713 = shalt.err (!%p710_p10)
}
  0x1b   :  { %s714_s1 = scalar_lea.vmem %s18_s27, 128  ;;  %p719_p12 = scmp.lt.s32.totalorder %s18_s27, %s18_s27 }
  0x1c   :  { %p715_p11 = scmp.ne.s32.totalorder %s18_s27, %s714_s1  ;;  %p720_p13 = scmp.lt.s32.totalorder %s714_s1, %s714_s1 }
  0x1e   :  { %p721_p0 = por %p720_p13, %p719_p12 }
  0x20   :  { %p722_p1 = pnand %p721_p0, %p715_p11 }
  0x22   :  { %725 = shalt.err (!%p722_p1)
}
  0x23   :  { %20 = dma.hbm_to_vmem [thread:$0]  %s886_s0, 128, %s18_s27, [#allocation3]  }
  0x24   :  { %s726_s14 = scalar_lea.hbm %s888_s2, 128 }
  0x25   :  { %p727_p2 = scmp.ne.s32.totalorder %s888_s2, %s726_s14  ;;  %p730_p3 = scmp.lt.u32.totalorder %s726_s14, %s888_s2 }
  0x27   :  { %p732_p4 = pnand %p730_p3, %p727_p2 }
  0x29   :  { %735 = shalt.err (!%p732_p4)
}
  0x2a   :  { %s736_s19 = scalar_lea.vmem %s40_s29, 128  ;;  %p741_p6 = scmp.lt.s32.totalorder %s40_s29, %s40_s29 }
  0x2b   :  { %p737_p5 = scmp.ne.s32.totalorder %s40_s29, %s736_s19  ;;  %p742_p7 = scmp.lt.s32.totalorder %s736_s19, %s736_s19 }
  0x2d   :  { %p743_p8 = por %p742_p7, %p741_p6 }
  0x2f   :  { %p744_p9 = pnand %p743_p8, %p737_p5 }
  0x31   :  { %747 = shalt.err (!%p744_p9)
}
  0x32   :  { %42 = dma.hbm_to_vmem [thread:$0]  %s888_s2, 128, %s40_s29, [#allocation6]  }
  0x33   :  { %770 = dma.done.wait [#allocation3], 128  }
  0x34   :  { %771 = vsyncadd [#allocation3], 4294967168 }
  0x35   :  { %772 = dma.done.wait [#allocation6], 6528  }
  0x36   :  { %773 = vsyncadd [#allocation6], 4294960768  ;;  %v781_v0 = vmov 0.0|0.0   ;;  %vm782_vm0 = vmmov 0   ;;  %v783_v1 = vmov 0.0   ;;  %v53_v2 = vld [vmem:[#allocation5] sm:$0xff] }
  0x37   :  { %598 = vmatprep.subr.bf16.mxu0 %v781_v0  ;;  %490 = vmatprep.mubr.msk.f32.mxu0 %vm782_vm0, %v783_v1  ;;  %v54_v3 = vld [vmem:[#allocation5 + $0x8] sm:$0xff]  ;;  %v135_v5 = vld [vmem:[#allocation5 + $0x10] sm:$0xff]  ;;  %v136_v6 = vld [vmem:[#allocation5 + $0x18] sm:$0xff]  ;;  %vm60_vm1 = vcmask 130048   ;;  %s784_s2 = smov [#allocation8]  }
  0x38   :  { %601 = vmatprep.subr.bf16.mxu1 %v781_v0  ;;  %525 = vmatprep.mubr.msk.f32.mxu1 %vm782_vm0, %v783_v1  ;;  %v599_v4 = vpack.c.bf16 %v54_v3, %v53_v2  ;;  %v137_v7 = vld [vmem:[#allocation5 + $0x20] sm:$0xff]  ;;  %v602_v8 = vpack.c.bf16 %v136_v6, %v135_v5  ;;  %v138_v9 = vld [vmem:[#allocation5 + $0x28] sm:$0xff]  ;;  %v52_v10 = vld [vmem:[#allocation2] sm:$0xff]  ;;  %s417_s21 = sshll.u32 %s784_s2, 4  ;;  %s418_s21 = int_to_ptr.vmem [resolvable:$true] %s417_s21 }
  0x39   :  { %v605_v11 = vpack.c.bf16 %v138_v9, %v137_v7  ;;  %v139_v12 = vld [vmem:[#allocation5 + $0x30] sm:$0xff]  ;;  %v140_v13 = vld [vmem:[#allocation5 + $0x38] sm:$0xff]  ;;  %v141_v15 = vld [vmem:[#allocation5 + $0x40] sm:$0xff]  ;;  %s748_s22 = scalar_lea.vmem %s418_s21, 128  ;;  %p753_p11 = scmp.lt.s32.totalorder %s418_s21, %s418_s21 }
  0x3a   :  { %600 = vmatpush3.bf16.msra.mxu0 %v599_v4  ;;  %603 = vmatpush3.bf16.msra.mxu1 %v602_v8  ;;  %v608_v14 = vpack.c.bf16 %v140_v13, %v139_v12  ;;  %v142_v16 = vld [vmem:[#allocation5 + $0x48] sm:$0xff]  ;;  %v143_v18 = vld [vmem:[#allocation5 + $0x50] sm:$0xff]  ;;  %v144_v19 = vld [vmem:[#allocation5 + $0x58] sm:$0xff]  ;;  %p749_p10 = scmp.ne.s32.totalorder %s418_s21, %s748_s22  ;;  %p754_p12 = scmp.lt.s32.totalorder %s748_s22, %s748_s22 }
  0x3b   :  { %625 = vmatprep.subr.bf16.mxu0 %v781_v0  ;;  %604 = vmatprep.subr.bf16.mxu1 %v781_v0  ;;  %v611_v17 = vpack.c.bf16 %v142_v16, %v141_v15  ;;  %v614_v20 = vpack.c.bf16 %v144_v19, %v143_v18  ;;  %v145_v21 = vld [vmem:[#allocation5 + $0x60] sm:$0xff]  ;;  %v146_v22 = vld [vmem:[#allocation5 + $0x68] sm:$0xff]  ;;  %v147_v24 = vld [vmem:[#allocation5 + $0x70] sm:$0xff] }
  0x3c   :  { %v617_v23 = vpack.c.bf16 %v146_v22, %v145_v21  ;;  %v148_v25 = vld [vmem:[#allocation5 + $0x78] sm:$0xff]  ;;  %v149_v27 = vld [vmem:[#allocation5 + $0x80] sm:$0xff]  ;;  %v150_v28 = vld [vmem:[#allocation5 + $0x88] sm:$0xff]  ;;  %p755_p13 = por %p754_p12, %p753_p11 }
  0x3d   :  { %491 = vmatmul.mubr.msk.f32.vlgmr.msra.gmra.mrb[0].mxu0 %vm60_vm1, %v52_v10  ;;  %v620_v26 = vpack.c.bf16 %v148_v25, %v147_v24  ;;  %v623_v29 = vpack.c.bf16 %v150_v28, %v149_v27  ;;  %v227_v30 = vld [vmem:[#allocation5 + $0x90] sm:$0xff]  ;;  %v228_v31 = vld [vmem:[#allocation5 + $0x98] sm:$0xff]  ;;  %v229_v32 = vld [vmem:[#allocation5 + $0xa0] sm:$0xff] }
  0x3e   :  { %560 = vmatprep.mubr.msk.f32.mxu0 %vm782_vm0, %v783_v1  ;;  %606 = vmatpush3.bf16.msra.mxu1 %v605_v11  ;;  %v626_v33 = vpack.c.bf16 %v228_v31, %v227_v30  ;;  %v230_v34 = vld [vmem:[#allocation5 + $0xa8] sm:$0xff]  ;;  %v231_v36 = vld [vmem:[#allocation5 + $0xb0] sm:$0xff]  ;;  %v232_v37 = vld [vmem:[#allocation5 + $0xb8] sm:$0xff]  ;;  %p756_p0 = pnand %p755_p13, %p749_p10 }
  0x3f   :  { %607 = vmatprep.subr.bf16.mxu1 %v781_v0  ;;  %v629_v35 = vpack.c.bf16 %v230_v34, %v229_v32  ;;  %v632_v38 = vpack.c.bf16 %v232_v37, %v231_v36  ;;  %v233_v39 = vld [vmem:[#allocation5 + $0xc0] sm:$0xff]  ;;  %v234_v40 = vld [vmem:[#allocation5 + $0xc8] sm:$0xff]  ;;  %v235_v42 = vld [vmem:[#allocation5 + $0xd0] sm:$0xff] }
  0x40   :  { %627 = vmatpush3.bf16.msra.mxu0 %v626_v33  ;;  %v635_v41 = vpack.c.bf16 %v234_v40, %v233_v39  ;;  %v236_v43 = vld [vmem:[#allocation5 + $0xd8] sm:$0xff]  ;;  %v237_v45 = vld [vmem:[#allocation5 + $0xe0] sm:$0xff]  ;;  %v238_v46 = vld [vmem:[#allocation5 + $0xe8] sm:$0xff] }
  0x41   :  { %628 = vmatprep.subr.bf16.mxu0 %v781_v0  ;;  %v638_v44 = vpack.c.bf16 %v236_v43, %v235_v42  ;;  %v641_v47 = vpack.c.bf16 %v238_v46, %v237_v45  ;;  %v239_v48 = vld [vmem:[#allocation5 + $0xf0] sm:$0xff]  ;;  %v240_v49 = vld [vmem:[#allocation5 + $0xf8] sm:$0xff]  ;;  %v241_v56 = vld [vmem:[#allocation5 + $0x100] sm:$0xff] }
  0x42   :  { %609 = vmatpush3.bf16.msra.mxu1 %v608_v14  ;;  %v644_v50 = vpack.c.bf16 %v240_v49, %v239_v48  ;;  %v427_v51 = vld [vmem:[#allocation7] ss:$0 sm:$0xff]  ;;  %v242_v57 = vld [vmem:[#allocation5 + $0x108] sm:$0xff]  ;;  %v320_v60 = vld [vmem:[#allocation5 + $0x118] sm:$0xff] }
  0x43   :  { %610 = vmatprep.subr.bf16.mxu1 %v781_v0  ;;  %v647_v58 = vpack.c.bf16 %v242_v57, %v241_v56  ;;  %v319_v59 = vld [vmem:[#allocation5 + $0x110] sm:$0xff]  ;;  %v321_v61 = vld [vmem:[#allocation5 + $0x120] sm:$0xff]  ;;  %v322_v63 = vld [vmem:[#allocation5 + $0x128] sm:$0xff] }
  0x44   :  { %630 = vmatpush3.bf16.msra.mxu0 %v629_v35  ;;  %v650_v62 = vpack.c.bf16 %v320_v60, %v319_v59  ;;  %v653_v2 = vpack.c.bf16 %v322_v63, %v321_v61  ;;  %v323_v3 = vld [vmem:[#allocation5 + $0x130] sm:$0xff]  ;;  %v324_v4 = vld [vmem:[#allocation5 + $0x138] sm:$0xff]  ;;  %v326_v6 = vld [vmem:[#allocation5 + $0x148] sm:$0xff] }
  0x45   :  { %631 = vmatprep.subr.bf16.mxu0 %v781_v0  ;;  %v656_v5 = vpack.c.bf16 %v324_v4, %v323_v3  ;;  %v327_v8 = vld [vmem:[#allocation5 + $0x150] sm:$0xff]  ;;  %v328_v9 = vld [vmem:[#allocation5 + $0x158] sm:$0xff]  ;;  %v329_v11 = vld [vmem:[#allocation5 + $0x160] sm:$0xff] }
  0x46   :  { %612 = vmatpush3.bf16.msra.mxu1 %v611_v17  ;;  %v662_v10 = vpack.c.bf16 %v328_v9, %v327_v8  ;;  %v330_v12 = vld [vmem:[#allocation5 + $0x168] sm:$0xff]  ;;  %v331_v14 = vld [vmem:[#allocation5 + $0x170] sm:$0xff]  ;;  %v332_v15 = vld [vmem:[#allocation5 + $0x178] sm:$0xff] }
  0x47   :  { %613 = vmatprep.subr.bf16.mxu1 %v781_v0  ;;  %v665_v13 = vpack.c.bf16 %v330_v12, %v329_v11  ;;  %v668_v16 = vpack.c.bf16 %v332_v15, %v331_v14  ;;  %v429_v17 = vld [vmem:[#allocation7 + $0x1] ss:$0 sm:$0xff]  ;;  %v333_v22 = vld [vmem:[#allocation5 + $0x180] sm:$0xff]  ;;  %v430_v25 = vld [vmem:[#allocation7 + $0x2] ss:$0 sm:$0xff] }
  0x48   :  { %633 = vmatpush3.bf16.msra.mxu0 %v632_v38  ;;  %v431_v30 = vld [vmem:[#allocation7 + $0x3] ss:$0 sm:$0xff] }
  0x49   :  { %634 = vmatprep.subr.bf16.mxu0 %v781_v0 }
  0x4a   :  { %615 = vmatpush3.bf16.msra.mxu1 %v614_v20 }
  0x4b   :  { %616 = vmatprep.subr.bf16.mxu1 %v781_v0 }
  0x4c   :  { %636 = vmatpush3.bf16.msra.mxu0 %v635_v41 }
  0x4d   :  { %637 = vmatprep.subr.bf16.mxu0 %v781_v0 }
  0x4e   :  { %618 = vmatpush3.bf16.msra.mxu1 %v617_v23  ;;  %v334_v23 = vld [vmem:[#allocation5 + $0x188] sm:$0xff] }
  0x4f   :  { %619 = vmatprep.subr.bf16.mxu1 %v781_v0  ;;  %v671_v24 = vpack.c.bf16 %v334_v23, %v333_v22 }
  0x50   :  { %639 = vmatpush3.bf16.msra.mxu0 %v638_v44 }
  0x51   :  { %640 = vmatprep.subr.bf16.mxu0 %v781_v0 }
  0x52   :  { %621 = vmatpush3.bf16.msra.mxu1 %v620_v26 }
  0x53   :  { %622 = vmatprep.subr.bf16.mxu1 %v781_v0 }
  0x54   :  { %642 = vmatpush3.bf16.msra.mxu0 %v641_v47 }
  0x55   :  { %643 = vmatprep.subr.bf16.mxu0 %v781_v0 }
  0x56   :  { %624 = vmatpush3.bf16.msra.mxu1 %v623_v29 }
  0x57   :  { %649 = vmatprep.subr.bf16.mxu1 %v781_v0 }
  0x58   :  { %645 = vmatpush3.bf16.msra.mxu0 %v644_v50 }
  0x59   :  { %646 = vmatprep.subr.bf16.mxu0 %v781_v0 }
  0x5c   :  { %648 = vmatpush3.bf16.msra.mxu0 %v647_v58 }
 0x110   :  { %v130_v52 = vpop.f32.mrb[0].mxu0 }
 0x111   :  { %v131_v53 = vadd.f32 %v427_v51, %v130_v52  ;;  %v492_v54 = vpop.f32.mrb[1].mxu0 }
 0x113   :  { %v134_v55 = vmax.f32 %v131_v53, 0.0 }
 0x115   :  { %526 = vmatmul.mubr.f32.vlgmr.msra.gmra.mrb[0].mxu1 %v134_v55 }
 0x116   :  { %595 = vmatprep.mubr.msk.f32.mxu1 %vm782_vm0, %v783_v1  ;;  %651 = vmatpush3.bf16.msra.mxu1 %v650_v62  ;;  %v325_v1 = vld [vmem:[#allocation5 + $0x140] sm:$0xff] }
 0x117   :  { %652 = vmatprep.subr.bf16.mxu1 %v781_v0  ;;  %v659_v7 = vpack.c.bf16 %v326_v6, %v325_v1 }
 0x11a   :  { %654 = vmatpush3.bf16.msra.mxu1 %v653_v2 }
 0x11b   :  { %655 = vmatprep.subr.bf16.mxu1 %v781_v0 }
 0x11e   :  { %657 = vmatpush3.bf16.msra.mxu1 %v656_v5 }
 0x11f   :  { %658 = vmatprep.subr.bf16.mxu1 %v781_v0 }
 0x122   :  { %660 = vmatpush3.bf16.msra.mxu1 %v659_v7 }
 0x123   :  { %661 = vmatprep.subr.bf16.mxu1 %v781_v0 }
 0x126   :  { %663 = vmatpush3.bf16.msra.mxu1 %v662_v10 }
 0x127   :  { %664 = vmatprep.subr.bf16.mxu1 %v781_v0 }
 0x12a   :  { %666 = vmatpush3.bf16.msra.mxu1 %v665_v13 }
 0x12b   :  { %667 = vmatprep.subr.bf16.mxu1 %v781_v0 }
 0x12e   :  { %669 = vmatpush3.bf16.msra.mxu1 %v668_v16 }
 0x12f   :  { %670 = vmatprep.subr.bf16.mxu1 %v781_v0 }
 0x132   :  { %672 = vmatpush3.bf16.msra.mxu1 %v671_v24 }
 0x1e8   :  { %v222_v18 = vpop.f32.mrb[0].mxu1 }
 0x1e9   :  { %v223_v19 = vadd.f32 %v429_v17, %v222_v18  ;;  %v527_v20 = vpop.f32.mrb[1].mxu1 }
 0x1eb   :  { %v226_v21 = vmax.f32 %v223_v19, 0.0 }
 0x1ed   :  { %561 = vmatmul.mubr.f32.vlgmr.msra.gmra.mrb[2].mxu0 %v226_v21 }
 0x2c0   :  { %v314_v26 = vpop.f32.mrb[2].mxu0 }
 0x2c1   :  { %v315_v27 = vadd.f32 %v430_v25, %v314_v26  ;;  %v562_v28 = vpop.f32.mrb[3].mxu0 }
 0x2c3   :  { %v318_v29 = vmax.f32 %v315_v27, 0.0 }
 0x2c5   :  { %596 = vmatmul.mubr.f32.vlgmr.msra.gmra.mrb[2].mxu1 %v318_v29 }
 0x398   :  { %v406_v0 = vpop.f32.mrb[2].mxu1 }
 0x399   :  { %v407_v31 = vadd.f32 %v431_v30, %v406_v0  ;;  %v597_v32 = vpop.f32.mrb[3].mxu1 }
 0x39b   :  { %410 = vst [vmem:[#allocation8] sm:$0xff] %v407_v31 }
 0x39c   :  { %759 = shalt.err (!%p756_p0)
}
 0x39d   :  { %s760_s25 = scalar_lea.hbm %s889_s3, 128 }
 0x39e   :  { %p761_p1 = scmp.ne.s32.totalorder %s889_s3, %s760_s25  ;;  %p764_p2 = scmp.lt.u32.totalorder %s760_s25, %s889_s3 }
 0x3a0   :  { %p766_p3 = pnand %p764_p2, %p761_p1 }
 0x3a2   :  { %769 = shalt.err (!%p766_p3)
}
 0x3a3   :  { %420 = dma.vmem_to_hbm [thread:$0]  %s418_s21, 128, %s889_s3, [#allocation4]  }
 0x3a4   :  { %774 = dma.done.wait [#allocation4], 128  }
 0x3a5   :  { %775 = vsyncadd [#allocation4], 4294967168 }
 0x3a6   :  { %424 = vsyncpa [#allocation3], 1 }
 0x3a7   :  { %425 = vsyncpa [#allocation6], 1 }
 0x3a8   :  { %426 = vsyncpa [#allocation4], 1 }

</bundles_post_ra>
